<compile_context>
chip_gen: v6e
topology: v6e:2x2x1
jax: 0.10.0
libtpu: 0.0.40
codegen_flags: <defaults>
</compile_context>

<pallas_src>
import functools

import jax
import jax.numpy as jnp
from jax.experimental import pallas as pl
from jax.experimental.pallas import tpu as pltpu


def _round_up(x, m):
    return ((x + m - 1) // m) * m


def _vmem_capacity_bytes():
    try:
        return int(pltpu.get_tpu_info().vmem_capacity_bytes)
    except Exception:            # conservative default (v5e/v6e class: 128 MiB)
        return 128 * 1024 * 1024


def _choose_tiling(N, C, HW, target_block_bytes):
    """Pick (Nb, tile, n_tiles): samples per block, HW lanes per block, HW tiles."""
    row_bytes = 2 * _round_up(C, 8) * 4               # padded bytes per lane column
    lane_budget = max(128, (target_block_bytes // row_bytes) // 128 * 128)

    if HW <= lane_budget:
        tile, n_tiles = HW, 1                         # full-extent lane dim (always legal)
    else:
        tile = 0
        if HW % 128 == 0:
            # Largest multiple-of-128 divisor of HW within budget -> no tail masking.
            for k in range(lane_budget // 128, 0, -1):
                if HW % (128 * k) == 0:
                    tile = 128 * k
                    break
        if tile < max(128, lane_budget // 4):
            tile = lane_budget                        # masked tail (stats kernel masks it)
        n_tiles = -(-HW // tile)

    # Block several samples per step only when one tile already covers HW and the
    # block is still far below the byte target; keep >= 2 sample blocks (when
    # N >= 2) so the stats grid can still shard across TensorCores.
    Nb = 1
    if n_tiles == 1 and N > 1:
        budget_nb = max(1, target_block_bytes // (row_bytes * _round_up(tile, 128)))
        nb_cap = min(N, budget_nb, max(1, N // 2))
        for nb in range(nb_cap, 0, -1):
            if N % nb == 0:
                Nb = nb
                break
    return Nb, tile, n_tiles


# --------------------------------------------------------------------------
# Sweep 1: per-sample-block shifted raw moments, accumulated over HW tiles.
# --------------------------------------------------------------------------
def _stats_kernel(shift_ref, x_ref, mom_ref, *, hw, needs_mask):
    t = pl.program_id(1)

    @pl.when(t == 0)
    def _init():
        mom_ref[...] = jnp.zeros_like(mom_ref)

    tile = x_ref.shape[-1]
    C = mom_ref.shape[0]

    x = x_ref[...]                                    # (Nb, 2, C, tile)
    dr = x[:, 0:1, :, :] - shift_ref[:, 0:1]          # shifted real half
    di = x[:, 1:2, :, :] - shift_ref[:, 1:2]          # shifted imag half
    if needs_mask:                                    # static: only if HW % tile != 0
        lane = jax.lax.broadcasted_iota(jnp.int32, (1, 1, 1, tile), 3)
        valid = (lane + t * tile) < hw
        dr = jnp.where(valid, dr, 0.0)
        di = jnp.where(valid, di, 0.0)

    def red(a):                                       # (Nb, 1, C, tile) -> (C, 1)
        return jnp.sum(a, axis=(0, 1, 3), keepdims=True).reshape(C, 1)

    mom_ref[...] += jnp.concatenate(
        [red(dr), red(di), red(dr * dr), red(dr * di), red(di * di)], axis=1)


# --------------------------------------------------------------------------
# Sweep 2: apply — y = Z (x - mean) + B; two dense half-plane stores, no concat.
# --------------------------------------------------------------------------
def _apply_kernel(coef_ref, x_ref, o_ref):
    coef = coef_ref[...]                              # (C, 8)
    Mr, Mi = coef[:, 0:1], coef[:, 1:2]
    Zrr, Zri = coef[:, 2:3], coef[:, 3:4]
    Zir, Zii = coef[:, 4:5], coef[:, 5:6]
    Br, Bi = coef[:, 6:7], coef[:, 7:8]

    x = x_ref[...]                                    # (Nb, 2, C, tile)
    xr = x[:, 0:1, :, :] - Mr
    xi = x[:, 1:2, :, :] - Mi
    o_ref[:, 0:1, :, :] = Zrr * xr + Zri * xi + Br
    o_ref[:, 1:2, :, :] = Zir * xr + Zii * xi + Bi


@jax.jit
def complex_batch_norm(x, Wrr, Wri, Wii, Br, Bi, *, eps=1e-5):
    """Training-mode ComplexBatchNorm forward. x: (N, 2*C, H, W) -> same shape."""
    N, C2, H, W = x.shape
    C = C2 // 2
    HW = H * W
    M = N * HW

    x = x.astype(jnp.float32)
    x4 = x.reshape(N, 2, C, HW)                       # free reshape: (real, imag) planes

    # Generation-aware block budget + VMEM limit (v7x has 64 MiB physical VMEM).
    cap = _vmem_capacity_bytes()
    target_block_bytes = (3 << 20) if cap <= (64 << 20) else (6 << 20)
    Nb, tile, n_tiles = _choose_tiling(N, C, HW, target_block_bytes)
    n_nb = N // Nb
    grid = (n_nb, n_tiles)
    needs_mask = (tile * n_tiles != HW)

    block_bytes = Nb * 2 * _round_up(C, 8) * _round_up(tile, 128) * 4
    vmem_limit = int(min((3 * cap) // 4, max(32 << 20, 6 * block_bytes + (1 << 20))))

    x_spec = pl.BlockSpec((Nb, 2, C, tile), lambda nb, t: (nb, 0, 0, t))

    # Per-channel shift (first element of sample 0): keeps the raw-moment
    # accumulation numerically centered (avoids f32 cancellation in E[x^2]-m^2).
    shift = jnp.stack([x4[0, 0, :, 0], x4[0, 1, :, 0]], axis=1)        # (C, 2)

    # ---- Sweep 1: partial shifted moments, parallel over sample blocks. ----
    mom = pl.pallas_call(
        functools.partial(_stats_kernel, hw=HW, needs_mask=needs_mask),
        grid=grid,
        in_specs=[pl.BlockSpec((C, 2), lambda nb, t: (0, 0)), x_spec],
        out_specs=pl.BlockSpec((None, C, 5), lambda nb, t: (nb, 0, 0)),
        out_shape=jax.ShapeDtypeStruct((n_nb, C, 5), jnp.float32),
        compiler_params=pltpu.CompilerParams(
            dimension_semantics=("parallel", "arbitrary"),
            vmem_limit_bytes=vmem_limit),
    )(shift, x4)

    # ---- Tiny (C,)-sized finalize in plain JAX: combine, whiten, affine mix. ----
    s = jnp.sum(mom, axis=0)                          # (C, 5)
    inv_m = 1.0 / M
    mdr, mdi = s[:, 0] * inv_m, s[:, 1] * inv_m
    Mr = shift[:, 0] + mdr
    Mi = shift[:, 1] + mdi
    Vrr = jnp.maximum(s[:, 2] * inv_m - mdr * mdr, 0.0) + eps
    Vri = s[:, 3] * inv_m - mdr * mdi
    Vii = jnp.maximum(s[:, 4] * inv_m - mdi * mdi, 0.0) + eps
    tau = Vrr + Vii
    delta = jnp.maximum(Vrr * Vii - Vri * Vri, 1e-30)   # clamp: no sqrt(negative)
    sd = jnp.sqrt(delta)
    td = jnp.sqrt(tau + 2.0 * sd)
    rst = 1.0 / (sd * td)
    Urr, Uii, Uri = (sd + Vii) * rst, (sd + Vrr) * rst, -Vri * rst
    Wrr = Wrr.astype(jnp.float32)
    Wri = Wri.astype(jnp.float32)
    Wii = Wii.astype(jnp.float32)
    Zrr = Wrr * Urr + Wri * Uri
    Zri = Wrr * Uri + Wri * Uii
    Zir = Wri * Urr + Wii * Uri
    Zii = Wri * Uri + Wii * Uii
    coef = jnp.stack(
        [Mr, Mi, Zrr, Zri, Zir, Zii,
         Br.astype(jnp.float32), Bi.astype(jnp.float32)], axis=1)      # (C, 8)

    # ---- Sweep 2: fully parallel apply (megacore shards both grid axes). ----
    y4 = pl.pallas_call(
        _apply_kernel,
        grid=grid,
        in_specs=[pl.BlockSpec((C, 8), lambda nb, t: (0, 0)), x_spec],
        out_specs=pl.BlockSpec((Nb, 2, C, tile), lambda nb, t: (nb, 0, 0, t)),
        out_shape=jax.ShapeDtypeStruct((N, 2, C, HW), jnp.float32),
        compiler_params=pltpu.CompilerParams(
            dimension_semantics=("parallel", "parallel"),
            vmem_limit_bytes=vmem_limit),
    )(coef, x4)

    return y4.reshape(N, C2, H, W)


def _reference_jax(x, Wrr, Wri, Wii, Br, Bi, eps=1e-5):
    """Pure-JAX reference mirroring the PyTorch forward (training mode)."""
    C = x.shape[1] // 2
    xr, xi = x[:, :C], x[:, C:]
    redux = (0, 2, 3)
    Mr = jnp.mean(xr, axis=redux, keepdims=True)
    Mi = jnp.mean(xi, axis=redux, keepdims=True)
    xr, xi = xr - Mr, xi - Mi
    Vrr = jnp.mean(xr * xr, axis=redux, keepdims=True) + eps
    Vri = jnp.mean(xr * xi, axis=redux, keepdims=True)
    Vii = jnp.mean(xi * xi, axis=redux, keepdims=True) + eps
    tau = Vrr + Vii
    delta = Vrr * Vii - Vri * Vri
    s = jnp.sqrt(delta)
    t = jnp.sqrt(tau + 2 * s)
    rst = 1.0 / (s * t)
    Urr, Uii, Uri = (s + Vii) * rst, (s + Vrr) * rst, -Vri * rst
    vdim = (1, C, 1, 1)
    Wrr, Wri, Wii = Wrr.reshape(vdim), Wri.reshape(vdim), Wii.reshape(vdim)
    Zrr = Wrr * Urr + Wri * Uri
    Zri = Wrr * Uri + Wri * Uii
    Zir = Wri * Urr + Wii * Uri
    Zii = Wri * Uri + Wii * Uii
    yr = Zrr * xr + Zri * xi + Br.reshape(vdim)
    yi = Zir * xr + Zii * xi + Bi.reshape(vdim)
    return jnp.concatenate([yr, yi], axis=1)


if __name__ == "__main__":
    key = jax.random.PRNGKey(0)
    k_x, k_w = jax.random.split(key)

    N, num_features, H, W = 2, 4, 16, 16   # module num_features=4 -> C=2 per half
    C = num_features // 2

    x = jax.random.normal(k_x, (N, num_features, H, W), dtype=jnp.float32)

    # Deterministic parameter init matching reset_parameters():
    Wrr = jnp.ones((C,), jnp.float32)
    Wii = jnp.ones((C,), jnp.float32)
    Wri = jax.random.uniform(k_w, (C,), jnp.float32, minval=-0.9, maxval=0.9)
    Br = jnp.zeros((C,), jnp.float32)
    Bi = jnp.zeros((C,), jnp.float32)

    out = complex_batch_norm(x, Wrr, Wri, Wii, Br, Bi)
    out = jax.block_until_ready(out)

    ref = _reference_jax(x, Wrr, Wri, Wii, Br, Bi)
    assert out.shape == x.shape and out.dtype == x.dtype
    err = float(jnp.max(jnp.abs(out - ref)))
    assert err < 5e-4, f"mismatch vs reference: {err}"

    print("KERNEL_OK")
</pallas_src>

<mosaic_0001>
module attributes {stable_mosaic.version = 11 : i64} {
  func.func @_stats_kernel(%arg0: i32, %arg1: i32, %arg2: memref<2x2xf32, #tpu.memory_space<vmem>>, %arg3: memref<1x2x2x256xf32, #tpu.memory_space<vmem>>, %arg4: memref<1x2x5xf32, #tpu.memory_space<vmem>>) attributes {dimension_semantics = [#tpu.dimension_semantics<parallel>, #tpu.dimension_semantics<arbitrary>], iteration_bounds = array<i64: 2, 1>, scalar_prefetch = 0 : i64, scratch_operands = 0 : i64, tpu.core_type = #tpu.core_type<tc>, window_params = [{pipeline_mode = #tpu.pipeline_mode<synchronous>, transform_indices = @transform_0, window_bounds = array<i64: 2, 2>}, {transform_indices = @transform_1, window_bounds = array<i64: 1, 2, 2, 256>}, {transform_indices = @transform_2, window_bounds = array<i64: 1, 2, 5>}]} {
    %c0_i32 = arith.constant 0 : i32
    %0 = arith.cmpi eq, %arg1, %c0_i32 : i32
    %1 = arith.extui %0 : i1 to i32
    %c0_i32_0 = arith.constant 0 : i32
    %2 = arith.cmpi ne, %1, %c0_i32_0 : i32
    scf.if %2 {
      %cst_17 = arith.constant 0.000000e+00 : f32
      %39 = vector.broadcast %cst_17 : f32 to vector<2x5xf32>
      %c0_18 = arith.constant 0 : index
      %c0_19 = arith.constant 0 : index
      %c0_20 = arith.constant 0 : index
      %40 = vector.load %arg4[%c0_18, %c0_19, %c0_20] : memref<1x2x5xf32, #tpu.memory_space<vmem>>, vector<1x2x5xf32>
      %41 = vector.shape_cast %40 : vector<1x2x5xf32> to vector<2x5xf32>
      %42 = vector.shape_cast %39 : vector<2x5xf32> to vector<1x2x5xf32>
      tpu.vector_store %arg4[%c0_18, %c0_19, %c0_20], %42 {strides = array<i32>} : memref<1x2x5xf32, #tpu.memory_space<vmem>>, vector<1x2x5xf32>,
    } else {
    }
    %c0 = arith.constant 0 : index
    %c0_1 = arith.constant 0 : index
    %c0_2 = arith.constant 0 : index
    %c0_3 = arith.constant 0 : index
    %3 = vector.load %arg3[%c0, %c0_1, %c0_2, %c0_3] : memref<1x2x2x256xf32, #tpu.memory_space<vmem>>, vector<1x2x2x256xf32>
    %4 = vector.extract_strided_slice %3 {offsets = [0, 0, 0, 0], sizes = [1, 1, 2, 256], strides = [1, 1, 1, 1]} : vector<1x2x2x256xf32> to vector<1x1x2x256xf32>
    %c0_4 = arith.constant 0 : index
    %c0_5 = arith.constant 0 : index
    %5 = vector.load %arg2[%c0_4, %c0_5] : memref<2x2xf32, #tpu.memory_space<vmem>>, vector<2x1xf32>
    %6 = vector.shape_cast %5 : vector<2x1xf32> to vector<1x1x2x1xf32>
    %7 = vector.broadcast %6 : vector<1x1x2x1xf32> to vector<1x1x2x256xf32>
    %8 = arith.subf %4, %7 : vector<1x1x2x256xf32>
    %9 = vector.extract_strided_slice %3 {offsets = [0, 1, 0, 0], sizes = [1, 1, 2, 256], strides = [1, 1, 1, 1]} : vector<1x2x2x256xf32> to vector<1x1x2x256xf32>
    %c0_6 = arith.constant 0 : index
    %c1 = arith.constant 1 : index
    %10 = vector.load %arg2[%c0_6, %c1] : memref<2x2xf32, #tpu.memory_space<vmem>>, vector<2x1xf32>
    %11 = vector.shape_cast %10 : vector<2x1xf32> to vector<1x1x2x1xf32>
    %12 = vector.broadcast %11 : vector<1x1x2x1xf32> to vector<1x1x2x256xf32>
    %13 = arith.subf %9, %12 : vector<1x1x2x256xf32>
    %c0_7 = arith.constant 0 : index
    %c0_8 = arith.constant 0 : index
    %c0_9 = arith.constant 0 : index
    %14 = vector.load %arg4[%c0_7, %c0_8, %c0_9] : memref<1x2x5xf32, #tpu.memory_space<vmem>>, vector<1x2x5xf32>
    %15 = vector.shape_cast %14 : vector<1x2x5xf32> to vector<2x5xf32>
    %cst = arith.constant dense<0.000000e+00> : vector<2xf32>
    %16 = vector.multi_reduction <add>, %8, %cst [0, 1, 3] : vector<1x1x2x256xf32> to vector<2xf32>
    %17 = vector.shape_cast %16 : vector<2xf32> to vector<1x1x2x1xf32>
    %18 = vector.shape_cast %17 : vector<1x1x2x1xf32> to vector<2x1xf32>
    %cst_10 = arith.constant dense<0.000000e+00> : vector<2xf32>
    %19 = vector.multi_reduction <add>, %13, %cst_10 [0, 1, 3] : vector<1x1x2x256xf32> to vector<2xf32>
    %20 = vector.shape_cast %19 : vector<2xf32> to vector<1x1x2x1xf32>
    %21 = vector.shape_cast %20 : vector<1x1x2x1xf32> to vector<2x1xf32>
    %22 = arith.mulf %8, %8 : vector<1x1x2x256xf32>
    %cst_11 = arith.constant dense<0.000000e+00> : vector<2xf32>
    %23 = vector.multi_reduction <add>, %22, %cst_11 [0, 1, 3] : vector<1x1x2x256xf32> to vector<2xf32>
    %24 = vector.shape_cast %23 : vector<2xf32> to vector<1x1x2x1xf32>
    %25 = vector.shape_cast %24 : vector<1x1x2x1xf32> to vector<2x1xf32>
    %26 = arith.mulf %8, %13 : vector<1x1x2x256xf32>
    %cst_12 = arith.constant dense<0.000000e+00> : vector<2xf32>
    %27 = vector.multi_reduction <add>, %26, %cst_12 [0, 1, 3] : vector<1x1x2x256xf32> to vector<2xf32>
    %28 = vector.shape_cast %27 : vector<2xf32> to vector<1x1x2x1xf32>
    %29 = vector.shape_cast %28 : vector<1x1x2x1xf32> to vector<2x1xf32>
    %30 = arith.mulf %13, %13 : vector<1x1x2x256xf32>
    %cst_13 = arith.constant dense<0.000000e+00> : vector<2xf32>
    %31 = vector.multi_reduction <add>, %30, %cst_13 [0, 1, 3] : vector<1x1x2x256xf32> to vector<2xf32>
    %32 = vector.shape_cast %31 : vector<2xf32> to vector<1x1x2x1xf32>
    %33 = vector.shape_cast %32 : vector<1x1x2x1xf32> to vector<2x1xf32>
    %34 = tpu.concatenate %18, %21, %25, %29, %33 in 1 : vector<2x1xf32>, vector<2x1xf32>, vector<2x1xf32>, vector<2x1xf32>, vector<2x1xf32> -> vector<2x5xf32>
    %35 = arith.addf %15, %34 : vector<2x5xf32>
    %c0_14 = arith.constant 0 : index
    %c0_15 = arith.constant 0 : index
    %c0_16 = arith.constant 0 : index
    %36 = vector.load %arg4[%c0_14, %c0_15, %c0_16] : memref<1x2x5xf32, #tpu.memory_space<vmem>>, vector<1x2x5xf32>
    %37 = vector.shape_cast %36 : vector<1x2x5xf32> to vector<2x5xf32>
    %38 = vector.shape_cast %35 : vector<2x5xf32> to vector<1x2x5xf32>
    tpu.vector_store %arg4[%c0_14, %c0_15, %c0_16], %38 {strides = array<i32>} : memref<1x2x5xf32, #tpu.memory_space<vmem>>, vector<1x2x5xf32>,
    return
  }
  func.func @transform_0(%arg0: i32, %arg1: i32) -> (i32, i32) {
    %c0_i32 = arith.constant 0 : i32
    %c0_i32_0 = arith.constant 0 : i32
    %c0_i32_1 = arith.constant 0 : i32
    return %c0_i32, %c0_i32_0 : i32, i32
  }
  func.func @transform_1(%arg0: i32, %arg1: i32) -> (i32, i32, i32, i32) {
    %c0_i32 = arith.constant 0 : i32
    %c0_i32_0 = arith.constant 0 : i32
    %c0_i32_1 = arith.constant 0 : i32
    return %arg0, %c0_i32, %c0_i32_0, %arg1 : i32, i32, i32, i32
  }
  func.func @transform_2(%arg0: i32, %arg1: i32) -> (i32, i32, i32) {
    %c0_i32 = arith.constant 0 : i32
    %c0_i32_0 = arith.constant 0 : i32
    %c0_i32_1 = arith.constant 0 : i32
    return %arg0, %c0_i32, %c0_i32_0 : i32, i32, i32
  }
}

module attributes {stable_mosaic.version = 11 : i64} {
  func.func @_apply_kernel(%arg0: i32, %arg1: i32, %arg2: memref<2x8xf32, #tpu.memory_space<vmem>>, %arg3: memref<1x2x2x256xf32, #tpu.memory_space<vmem>>, %arg4: memref<1x2x2x256xf32, #tpu.memory_space<vmem>>) attributes {dimension_semantics = [#tpu.dimension_semantics<parallel>, #tpu.dimension_semantics<parallel>], iteration_bounds = array<i64: 2, 1>, scalar_prefetch = 0 : i64, scratch_operands = 0 : i64, tpu.core_type = #tpu.core_type<tc>, window_params = [{pipeline_mode = #tpu.pipeline_mode<synchronous>, transform_indices = @transform_0, window_bounds = array<i64: 2, 8>}, {transform_indices = @transform_1, window_bounds = array<i64: 1, 2, 2, 256>}, {transform_indices = @transform_2, window_bounds = array<i64: 1, 2, 2, 256>}]} {
    %c0 = arith.constant 0 : index
    %c0_0 = arith.constant 0 : index
    %0 = vector.load %arg2[%c0, %c0_0] : memref<2x8xf32, #tpu.memory_space<vmem>>, vector<2x8xf32>
    %1 = vector.extract_strided_slice %0 {offsets = [0, 0], sizes = [2, 1], strides = [1, 1]} : vector<2x8xf32> to vector<2x1xf32>
    %2 = vector.extract_strided_slice %0 {offsets = [0, 1], sizes = [2, 1], strides = [1, 1]} : vector<2x8xf32> to vector<2x1xf32>
    %3 = vector.extract_strided_slice %0 {offsets = [0, 2], sizes = [2, 1], strides = [1, 1]} : vector<2x8xf32> to vector<2x1xf32>
    %4 = vector.extract_strided_slice %0 {offsets = [0, 3], sizes = [2, 1], strides = [1, 1]} : vector<2x8xf32> to vector<2x1xf32>
    %5 = vector.extract_strided_slice %0 {offsets = [0, 4], sizes = [2, 1], strides = [1, 1]} : vector<2x8xf32> to vector<2x1xf32>
    %6 = vector.extract_strided_slice %0 {offsets = [0, 5], sizes = [2, 1], strides = [1, 1]} : vector<2x8xf32> to vector<2x1xf32>
    %7 = vector.extract_strided_slice %0 {offsets = [0, 6], sizes = [2, 1], strides = [1, 1]} : vector<2x8xf32> to vector<2x1xf32>
    %8 = vector.extract_strided_slice %0 {offsets = [0, 7], sizes = [2, 1], strides = [1, 1]} : vector<2x8xf32> to vector<2x1xf32>
    %c0_1 = arith.constant 0 : index
    %c0_2 = arith.constant 0 : index
    %c0_3 = arith.constant 0 : index
    %c0_4 = arith.constant 0 : index
    %9 = vector.load %arg3[%c0_1, %c0_2, %c0_3, %c0_4] : memref<1x2x2x256xf32, #tpu.memory_space<vmem>>, vector<1x2x2x256xf32>
    %10 = vector.extract_strided_slice %9 {offsets = [0, 0, 0, 0], sizes = [1, 1, 2, 256], strides = [1, 1, 1, 1]} : vector<1x2x2x256xf32> to vector<1x1x2x256xf32>
    %11 = vector.shape_cast %1 : vector<2x1xf32> to vector<1x1x2x1xf32>
    %12 = vector.broadcast %11 : vector<1x1x2x1xf32> to vector<1x1x2x256xf32>
    %13 = arith.subf %10, %12 : vector<1x1x2x256xf32>
    %14 = vector.extract_strided_slice %9 {offsets = [0, 1, 0, 0], sizes = [1, 1, 2, 256], strides = [1, 1, 1, 1]} : vector<1x2x2x256xf32> to vector<1x1x2x256xf32>
    %15 = vector.shape_cast %2 : vector<2x1xf32> to vector<1x1x2x1xf32>
    %16 = vector.broadcast %15 : vector<1x1x2x1xf32> to vector<1x1x2x256xf32>
    %17 = arith.subf %14, %16 : vector<1x1x2x256xf32>
    %18 = vector.shape_cast %3 : vector<2x1xf32> to vector<1x1x2x1xf32>
    %19 = vector.broadcast %18 : vector<1x1x2x1xf32> to vector<1x1x2x256xf32>
    %20 = arith.mulf %19, %13 : vector<1x1x2x256xf32>
    %21 = vector.shape_cast %4 : vector<2x1xf32> to vector<1x1x2x1xf32>
    %22 = vector.broadcast %21 : vector<1x1x2x1xf32> to vector<1x1x2x256xf32>
    %23 = arith.mulf %22, %17 : vector<1x1x2x256xf32>
    %24 = arith.addf %20, %23 : vector<1x1x2x256xf32>
    %25 = vector.shape_cast %7 : vector<2x1xf32> to vector<1x1x2x1xf32>
    %26 = vector.broadcast %25 : vector<1x1x2x1xf32> to vector<1x1x2x256xf32>
    %27 = arith.addf %24, %26 : vector<1x1x2x256xf32>
    %c0_5 = arith.constant 0 : index
    %c0_6 = arith.constant 0 : index
    %c0_7 = arith.constant 0 : index
    %c0_8 = arith.constant 0 : index
    %28 = vector.load %arg4[%c0_5, %c0_6, %c0_7, %c0_8] : memref<1x2x2x256xf32, #tpu.memory_space<vmem>>, vector<1x1x2x256xf32>
    tpu.vector_store %arg4[%c0_5, %c0_6, %c0_7, %c0_8], %27 {strides = array<i32>} : memref<1x2x2x256xf32, #tpu.memory_space<vmem>>, vector<1x1x2x256xf32>,
    %29 = vector.shape_cast %5 : vector<2x1xf32> to vector<1x1x2x1xf32>
    %30 = vector.broadcast %29 : vector<1x1x2x1xf32> to vector<1x1x2x256xf32>
    %31 = arith.mulf %30, %13 : vector<1x1x2x256xf32>
    %32 = vector.shape_cast %6 : vector<2x1xf32> to vector<1x1x2x1xf32>
    %33 = vector.broadcast %32 : vector<1x1x2x1xf32> to vector<1x1x2x256xf32>
    %34 = arith.mulf %33, %17 : vector<1x1x2x256xf32>
    %35 = arith.addf %31, %34 : vector<1x1x2x256xf32>
    %36 = vector.shape_cast %8 : vector<2x1xf32> to vector<1x1x2x1xf32>
    %37 = vector.broadcast %36 : vector<1x1x2x1xf32> to vector<1x1x2x256xf32>
    %38 = arith.addf %35, %37 : vector<1x1x2x256xf32>
    %c0_9 = arith.constant 0 : index
    %c1 = arith.constant 1 : index
    %c0_10 = arith.constant 0 : index
    %c0_11 = arith.constant 0 : index
    %39 = vector.load %arg4[%c0_9, %c1, %c0_10, %c0_11] : memref<1x2x2x256xf32, #tpu.memory_space<vmem>>, vector<1x1x2x256xf32>
    tpu.vector_store %arg4[%c0_9, %c1, %c0_10, %c0_11], %38 {strides = array<i32>} : memref<1x2x2x256xf32, #tpu.memory_space<vmem>>, vector<1x1x2x256xf32>,
    return
  }
  func.func @transform_0(%arg0: i32, %arg1: i32) -> (i32, i32) {
    %c0_i32 = arith.constant 0 : i32
    %c0_i32_0 = arith.constant 0 : i32
    %c0_i32_1 = arith.constant 0 : i32
    return %c0_i32, %c0_i32_0 : i32, i32
  }
  func.func @transform_1(%arg0: i32, %arg1: i32) -> (i32, i32, i32, i32) {
    %c0_i32 = arith.constant 0 : i32
    %c0_i32_0 = arith.constant 0 : i32
    %c0_i32_1 = arith.constant 0 : i32
    return %arg0, %c0_i32, %c0_i32_0, %arg1 : i32, i32, i32, i32
  }
  func.func @transform_2(%arg0: i32, %arg1: i32) -> (i32, i32, i32, i32) {
    %c0_i32 = arith.constant 0 : i32
    %c0_i32_0 = arith.constant 0 : i32
    %c0_i32_1 = arith.constant 0 : i32
    return %arg0, %c0_i32, %c0_i32_0, %arg1 : i32, i32, i32, i32
  }
}

</mosaic_0001>

<bundles_post_ra>
// kernel: complex_batch_norm.2
= control target key start
LH: loop header
LB: loop body
LE: loop exit
PB: predicated region body
PF: predicated region fallthrough
CT: control target
= control target key end

     0   :  { %s453_s9 = smov 0   ;;  %s455_s10 = smov 0   ;;  %s505_s0 = inlined_call_operand.vmem [shape: f32[2,2], index: 0, kind: input, shape index: {}]   ;;  %s506_s1 = inlined_call_operand.vmem [shape: f32[2,2,2,256], index: 1, kind: input, shape index: {}]   ;;  %s507_s2 = inlined_call_operand.vmem [shape: f32[2,2,5], index: 2, kind: output, shape index: {}]  }
   0x1   :  { %s457_s11 = smov 0  }
   0x2 LB: > { %s24_s12 = sadd.s32 1, %s427_s10  ;;  %p371_p0 = scmp.ge.s32.totalorder %s431_s11, 1  ;;  %s431_s11 = sphi %s457_s11, %s12_s11   ;;  %s427_s10 = sphi %s455_s10, %s509_s10   ;;  %s423_s9 = sphi %s453_s9, %s508_s9  }
   0x3   : > { %p26_p1 = scmp.ge.s32.totalorder %s24_s12, 2  ;;  %p131_p2 = scmp.lt.s32.totalorder %s431_s11, 3 }
   0x5   : > { %s511_s12 = smov (%p26_p1, %s24_s12), 0  ;;  %p132_p3 = pnand %p371_p0, %p131_p2 }
   0x6   : > { %p157_p4 = scmp.lt.s32.totalorder (!%p132_p3), %s423_s9, 1 }
   0x7   : > { %135 = sbr.rel (%p132_p3) target bundleno = 304 (0x130), region = 28 }
   0xc   : > { %v178_v0 = vld [vmem:[%s505_s0] sm:$0x3]  ;;  %v433_v1 = vmov 0   ;;  %v434_v2 = vmov 1   ;;  %v435_v3 = vmov 269488144   ;;  %v186_v5 = vlaneseq }
   0xd   : > { %407 = vset.pattern.permute.xlu0 %v433_v1  ;;  %v184_v4 = vunpack.c.l.s4 %v435_v3  ;;  %s513_s9 = smov (!%p157_p4, %s423_s9), 1  ;;  %v436_v8 = vmov 1983009808   ;;  %vm216_vm0 = vcmask 1041408   ;;  %vm174_vm1 = vcmask 33792  }
   0xe   : > { %181 = vperm.xlu0 %407, %v178_v0   ;;  %v187_v7 = vshrl.u32 %v186_v5, 7  ;;  %v207_v9 = vunpack.c.l.s4 %v436_v8  ;;  %s377_s15 = sshll.u32 %s513_s9, 3  ;;  %s374_s19 = sshll.u32 %s513_s9, 1  ;;  %v437_v49 = vmov 0.0   ;;  %vm289_vm2 = vcmask 7168  }
   0xf   : > { %v185_v6 = vunpack.c.0.s8 %v184_v4  ;;  %s164_s18 = scalar_lea.vmem %s506_s1, %s377_s15  ;;  %s169_s22 = scalar_lea.vmem %s507_s2, %s374_s19  ;;  %vm291_vm3 = vcmask 15360   ;;  %vm293_vm4 = vcmask 23552   ;;  %vm295_vm5 = vcmask 31744  }
  0x10   : > { %v208_v11 = vunpack.c.0.s8 %v207_v9  ;;  %v176_v13 = vld [vmem:[%s164_s18] sm:$0xf]  ;;  %v177_v18 = vld [vmem:[%s164_s18 + $0x4] sm:$0xf]  ;;  %175 = vst.msk [vmem:[%s169_s22] sm:$0x3] %vm174_vm1, %v437_v49 }
  0x11   : > { %v188_v10 = vsub.s32 %v185_v6, %v187_v7 }
  0x12   : > { %408 = vset.pattern.permute.xlu0 %v434_v2  ;;  %v211_v14 = vsub.s32 %v208_v11, %v187_v7 }
  0x13   : > { %193 = vperm.xlu0 %408, %v178_v0  }
  0x17   : > { %v204_v56 = vld [vmem:[%s169_s22] sm:$0x3] }
  0x89   : > { %v182_v12 = vpop.permute.xlu0 %181 }
  0x8a   : > { %v189_v15 = vrot.slane %v182_v12, %v188_v10 }
  0x8c   : > { %v191_v16 = vsub.f32 %v176_v13, %v189_v15 }
  0x8e   : > { %v194_v17 = vpop.permute.xlu0 %193  ;;  %v212_v19 = vrot.slane %v191_v16, %v211_v14  ;;  %v238_v20 = vmul.f32 %v191_v16, %v191_v16 }
  0x8f   : > { %v201_v21 = vrot.slane %v194_v17, %v188_v10 }
  0x90   : > { %v213_v22 = vcombine.high %v212_v19, %v212_v19  ;;  %v246_v24 = vrot.slane %v238_v20, %v211_v14  ;;  %v217_v25 = vsel %vm216_vm0, %v212_v19, 0.0 }
  0x91   : > { %v203_v23 = vsub.f32 %v177_v18, %v201_v21 }
  0x92   : > { %v218_v26 = vsel %vm216_vm0, %v213_v22, 0.0  ;;  %v247_v33 = vcombine.high %v246_v24, %v246_v24  ;;  %v250_v44 = vsel %vm216_vm0, %v246_v24, 0.0 }
  0x93   : > { %v219_v27 = vadd.f32 %v218_v26, %v217_v25  ;;  %v229_v28 = vrot.slane %v203_v23, %v211_v14  ;;  %v255_v29 = vmul.f32 %v203_v23, %v191_v16  ;;  %v272_v30 = vmul.f32 %v203_v23, %v203_v23 }
  0x94   : > { %v251_v41 = vsel %vm216_vm0, %v247_v33, 0.0 }
  0x95   : > { %220 = vadd.xlane.f32.xlu1 %v219_v27  ;;  %v230_v31 = vcombine.high %v229_v28, %v229_v28  ;;  %v263_v32 = vrot.slane %v255_v29, %v211_v14  ;;  %v280_v34 = vrot.slane %v272_v30, %v211_v14  ;;  %v233_v35 = vsel %vm216_vm0, %v229_v28, 0.0 }
  0x96   : > { %v252_v45 = vadd.f32 %v251_v41, %v250_v44 }
  0x97   : > { %v234_v36 = vsel %vm216_vm0, %v230_v31, 0.0  ;;  %v264_v37 = vcombine.high %v263_v32, %v263_v32  ;;  %v267_v39 = vsel %vm216_vm0, %v263_v32, 0.0  ;;  %v281_v42 = vcombine.high %v280_v34, %v280_v34 }
  0x98   : > { %v235_v38 = vadd.f32 %v234_v36, %v233_v35  ;;  %v284_v47 = vsel %vm216_vm0, %v280_v34, 0.0 }
  0x99   : > { %v268_v40 = vsel %vm216_vm0, %v264_v37, 0.0  ;;  %v285_v46 = vsel %vm216_vm0, %v281_v42, 0.0 }
  0x9a   : > { %236 = vadd.xlane.f32.xlu1 %v235_v38  ;;  %v269_v43 = vadd.f32 %v268_v40, %v267_v39  ;;  %v286_v48 = vadd.f32 %v285_v46, %v284_v47 }
  0x9c   : > { %270 = vadd.xlane.f32.xlu0 %v269_v43 }
  0x9e   : > { %253 = vadd.xlane.f32.xlu1 %v252_v45 }
  0xa2   : > { %287 = vadd.xlane.f32.xlu1 %v286_v48 }
 0x11e   : > { %v221_v50 = vpop.xlane.xlu1 %220 }
 0x123   : > { %v237_v51 = vpop.xlane.xlu1 %236 }
 0x124   : > { %v290_v52 = vsel %vm289_vm2, %v221_v50, %v237_v51 }
 0x125   : > { %v271_v55 = vpop.xlane.xlu0 %270 }
 0x127   : > { %v254_v53 = vpop.xlane.xlu1 %253 }
 0x128   : > { %v292_v54 = vsel %vm291_vm3, %v290_v52, %v254_v53 }
 0x129   : > { %v294_v57 = vsel %vm293_vm4, %v292_v54, %v271_v55 }
 0x12b   : > { %v288_v58 = vpop.xlane.xlu1 %287 }
 0x12c   : > { %v296_v59 = vsel %vm295_vm5, %v294_v57, %v288_v58 }
 0x12d   : > { %v297_v60 = vadd.f32 %v296_v59, %v204_v56 }
 0x12f   : > { %299 = vst.msk [vmem:[%s169_s22] sm:$0x3] %vm174_vm1, %v297_v60 }
 0x130 PF: > { %s12_s11 = sadd.s32 1, %s431_s11   ;;  %s508_s9 = smov %s427_s10 }
 0x131   : > { %p9_p5 = scmp.ge.s32.totalorder %s12_s11, 4   ;;  %s509_s10 = smov %s511_s12 }
 0x133   :  { %11 = sbr.rel (!%p9_p5) target bundleno = 2 (0x2), region = 62 }

// kernel: complex_batch_norm.3
= control target key start
LH: loop header
LB: loop body
LE: loop exit
PB: predicated region body
PF: predicated region fallthrough
CT: control target
= control target key end

     0   :  { %s493_s9 = smov 0   ;;  %s495_s10 = smov 0   ;;  %s540_s0 = inlined_call_operand.vmem [shape: f32[2,8], index: 0, kind: input, shape index: {}]   ;;  %s541_s1 = inlined_call_operand.vmem [shape: f32[2,2,2,256], index: 1, kind: input, shape index: {}]   ;;  %s542_s2 = inlined_call_operand.vmem [shape: f32[2,2,2,256], index: 2, kind: output, shape index: {}]  }
   0x1   :  { %s497_s11 = smov 0  }
   0x2 LB: > { %s24_s12 = sadd.s32 1, %s462_s10  ;;  %p389_p0 = scmp.ge.s32.totalorder %s466_s11, 1  ;;  %s466_s11 = sphi %s497_s11, %s12_s11   ;;  %s462_s10 = sphi %s495_s10, %s544_s10   ;;  %s458_s9 = sphi %s493_s9, %s543_s9  }
   0x3   : > { %p26_p1 = scmp.ge.s32.totalorder %s24_s12, 2  ;;  %p133_p2 = scmp.lt.s32.totalorder %s466_s11, 3 }
   0x5   : > { %s546_s12 = smov (%p26_p1, %s24_s12), 0  ;;  %p134_p3 = pnand %p389_p0, %p133_p2 }
   0x6   : > { %p164_p4 = scmp.lt.s32.totalorder (!%p134_p3), %s458_s9, 1 }
   0x7   : > { %137 = sbr.rel (%p134_p3) target bundleno = 163 (0xa3), region = 28 }
   0xc   : > { %v183_v0 = vld [vmem:[%s540_s0] sm:$0x3]  ;;  %v468_v1 = vmov 2   ;;  %v469_v2 = vmov 0   ;;  %v470_v3 = vmov 3   ;;  %v471_v4 = vmov 1  }
   0xd   : > { %437 = vset.pattern.permute.xlu1 %v468_v1  ;;  %435 = vset.pattern.permute.xlu0 %v469_v2  ;;  %v472_v5 = vmov 4   ;;  %v473_v6 = vmov 5   ;;  %v474_v7 = vmov 6   ;;  %v475_v8 = vmov 7   ;;  %s548_s9 = smov (!%p164_p4, %s458_s9), 1 }
   0xe   : > { %212 = vperm.xlu1 %437, %v183_v0   ;;  %188 = vperm.xlu0 %435, %v183_v0   ;;  %v476_v9 = vmov 269488144   ;;  %v193_v11 = vlaneseq  ;;  %v477_v14 = vmov 1983009808   ;;  %s398_s15 = sshll.u32 %s548_s9, 3 }
   0xf   : > { %v191_v10 = vunpack.c.l.s4 %v476_v9  ;;  %v217_v15 = vunpack.c.l.s4 %v477_v14  ;;  %s171_s18 = scalar_lea.vmem %s541_s1, %s398_s15  ;;  %s181_s21 = scalar_lea.vmem %s542_s2, %s398_s15 }
  0x10   : > { %v194_v13 = vshrl.u32 %v193_v11, 7  ;;  %v184_v20 = vld [vmem:[%s171_s18] sm:$0xf]  ;;  %v185_v26 = vld [vmem:[%s171_s18 + $0x4] sm:$0xf] }
  0x11   : > { %v192_v12 = vunpack.c.0.s8 %v191_v10  ;;  %v218_v17 = vunpack.c.0.s8 %v217_v15 }
  0x12   : > { %438 = vset.pattern.permute.xlu1 %v470_v3  ;;  %436 = vset.pattern.permute.xlu0 %v471_v4 }
  0x13   : > { %229 = vperm.xlu1 %438, %v183_v0   ;;  %200 = vperm.xlu0 %436, %v183_v0   ;;  %v195_v16 = vsub.s32 %v192_v12, %v194_v13  ;;  %v221_v22 = vsub.s32 %v218_v17, %v194_v13 }
  0x17   : > { %439 = vset.pattern.permute.xlu1 %v472_v5  ;;  %440 = vset.pattern.permute.xlu0 %v473_v6 }
  0x18   : > { %266 = vperm.xlu1 %439, %v183_v0   ;;  %272 = vperm.xlu0 %440, %v183_v0  }
  0x1c   : > { %441 = vset.pattern.permute.xlu1 %v474_v7  ;;  %443 = vset.pattern.permute.xlu0 %v475_v8 }
  0x1d   : > { %248 = vperm.xlu1 %441, %v183_v0  }
  0x21   : > { %442 = vset.pattern.permute.xlu1 %v475_v8 }
  0x22   : > { %280 = vperm.xlu1 %442, %v183_v0  }
  0x89   : > { %v213_v18 = vpop.permute.xlu1 %212  ;;  %v189_v19 = vpop.permute.xlu0 %188 }
  0x8a   : > { %v196_v21 = vrot.slane %v189_v19, %v195_v16 }
  0x8c   : > { %v198_v23 = vsub.f32 %v184_v20, %v196_v21 }
  0x8e   : > { %v230_v24 = vpop.permute.xlu1 %229  ;;  %v201_v25 = vpop.permute.xlu0 %200  ;;  %v222_v27 = vrot.slane %v198_v23, %v221_v22 }
  0x8f   : > { %v208_v28 = vrot.slane %v201_v25, %v195_v16 }
  0x90   : > { %v223_v32 = vcombine.high %v222_v27, %v222_v27  ;;  %v226_v35 = vmul.f32 %v222_v27, %v213_v18 }
  0x91   : > { %v210_v29 = vsub.f32 %v185_v26, %v208_v28 }
  0x92   : > { %v227_v38 = vmul.f32 %v223_v32, %v213_v18 }
  0x93   : > { %v239_v30 = vrot.slane %v210_v29, %v221_v22  ;;  %v267_v31 = vpop.permute.xlu1 %266  ;;  %v273_v33 = vpop.permute.xlu0 %272 }
  0x94   : > { %v269_v40 = vmul.f32 %v267_v31, %v222_v27  ;;  %v270_v45 = vmul.f32 %v267_v31, %v223_v32 }
  0x95   : > { %v240_v34 = vcombine.high %v239_v30, %v239_v30  ;;  %v243_v36 = vmul.f32 %v239_v30, %v230_v24  ;;  %v275_v41 = vmul.f32 %v273_v33, %v239_v30 }
  0x97   : > { %v244_v37 = vmul.f32 %v240_v34, %v230_v24  ;;  %v245_v39 = vadd.f32 %v243_v36, %v226_v35  ;;  %v276_v42 = vmul.f32 %v273_v33, %v240_v34  ;;  %v277_v48 = vadd.f32 %v275_v41, %v269_v40 }
  0x98   : > { %v249_v43 = vpop.permute.xlu1 %248 }
  0x99   : > { %v246_v44 = vadd.f32 %v244_v37, %v227_v38  ;;  %v251_v46 = vadd.f32 %v249_v43, %v245_v39  ;;  %v278_v49 = vadd.f32 %v276_v42, %v270_v45 }
  0x9b   : > { %v252_v47 = vadd.f32 %v249_v43, %v246_v44 }
  0x9d   : > { %v255_v50 = vcombine.low %v251_v46, %v252_v47  ;;  %v281_v51 = vpop.permute.xlu1 %280 }
  0x9e   : > { %v283_v52 = vadd.f32 %v281_v51, %v277_v48  ;;  %v284_v53 = vadd.f32 %v281_v51, %v278_v49 }
  0x9f   : > { %394 = vst.sshfl [vmem:[%s181_s21] sm:$0x33 pattern:$0x76325410] %v255_v50 }
  0xa0   : > { %v287_v54 = vcombine.low %v283_v52, %v284_v53 }
  0xa2   : > { %400 = vst.sshfl [vmem:[%s181_s21 + $0x4] sm:$0x33 pattern:$0x76325410] %v287_v54 }
  0xa3 PF: > { %s12_s11 = sadd.s32 1, %s466_s11   ;;  %s543_s9 = smov %s462_s10 }
  0xa4   : > { %p9_p5 = scmp.ge.s32.totalorder %s12_s11, 4   ;;  %s544_s10 = smov %s546_s12 }
  0xa6   :  { %11 = sbr.rel (!%p9_p5) target bundleno = 2 (0x2), region = 59 }

</bundles_post_ra>
